<compile_context>
chip_gen: v6e
topology: v6e:2x2x1
jax: 0.10.0
libtpu: 0.0.40
codegen_flags: <defaults>
</compile_context>

<pallas_src>
import functools

import jax
import jax.numpy as jnp
from jax.experimental import pallas as pl
from jax.experimental.pallas import tpu as pltpu


def _round_up(n, m):
    return ((n + m - 1) // m) * m


# ---------------------------------------------------------------------------
# Kernel
# ---------------------------------------------------------------------------
def sae_kernel(x_ref,
               w1t_ref, b1_ref,
               w2_ref, b2_ref,
               w3_ref, b3_ref,
               w4_ref, b4_ref,
               o_ref):
    """Whole 4-layer MLP forward for one batch tile, fused in VMEM."""
    # Cast the f32 input tile to bf16 in-kernel (VPU has slack; saves a
    # separate XLA convert/pad pass over x in HBM).
    x = x_ref[...].astype(w1t_ref.dtype)                              # (tb, Fp) bf16

    # fc1: w1 is stored transposed (20, Fp); contract on the last axis of both
    # operands so the resident weight stays lane-dense. MXU, f32 accumulate.
    h1 = jax.lax.dot_general(
        x, w1t_ref[...],
        dimension_numbers=(((1,), (1,)), ((), ())),
        preferred_element_type=jnp.float32) + b1_ref[...]
    h1 = jax.nn.sigmoid(h1)                                           # (tb, 20) f32

    # fc2 / fc3: tiny matmuls (bf16-in / f32-acc), negligible cost.
    h2 = jnp.dot(h1.astype(w2_ref.dtype), w2_ref[...],
                 preferred_element_type=jnp.float32) + b2_ref[...]
    h2 = jax.nn.sigmoid(h2)                                           # (tb, 10) f32

    h3 = jnp.dot(h2.astype(w3_ref.dtype), w3_ref[...],
                 preferred_element_type=jnp.float32) + b3_ref[...]
    h3 = jax.nn.sigmoid(h3)                                           # (tb, 20) f32

    # fc4: bf16 activations x bf16 (20, Fp) weight, f32 accumulate, bf16 store.
    out = jnp.dot(h3.astype(w4_ref.dtype), w4_ref[...],
                  preferred_element_type=jnp.float32) + b4_ref[...]
    o_ref[...] = out.astype(o_ref.dtype)                              # (tb, Fp) bf16


# ---------------------------------------------------------------------------
# Tiling / VMEM sizing (generation-aware)
# ---------------------------------------------------------------------------
def _vmem_budget_bytes():
    """Scoped-VMEM budget derived from the chip's physical VMEM capacity."""
    try:
        cap = int(pltpu.get_tpu_info().vmem_capacity_bytes)
    except Exception:
        # Conservative fallback (v7x has 64 MiB per TensorCore) if the
        # hardware query is unavailable; only affects tile sizing.
        cap = 64 * 1024 * 1024
    # Leave headroom; caps out at ~100 MiB on 128 MiB v5e/v6e, ~48 MiB on v7x.
    return max(32 * 1024 * 1024, min(cap - 16 * 1024 * 1024, 100 * 1024 * 1024))


def _pick_batch_tile(B, Fp, vmem_budget):
    """Largest batch tile that keeps the DMA pipeline (double-buffered x/out)
    plus the resident weights inside the VMEM budget."""
    # Residents: w1t + w4 (20, Fp) bf16 sublane-padded (~32 rows) + b4 (8, Fp) f32
    # + tiny hidden-layer params; small safety slack on top.
    resident_bytes = 160 * Fp + (256 << 10)
    # Per batch-row pipelined bytes: 2x f32 input tile + 2x bf16 output tile.
    per_row = 12 * Fp
    tb = (vmem_budget - resident_bytes) // per_row
    tb = max(16, min(int(tb), 2048))
    # Keep tiles sublane/lane friendly.
    tb = (tb // 128) * 128 if tb >= 128 else (tb // 16) * 16
    # Ensure >= 2 grid steps for reasonably sized batches so v7x's two
    # TensorCores both get work (harmless on single-TC v5e/v6e).
    if B >= 32:
        tb = min(tb, max(16, _round_up(pl.cdiv(B, 2), 16)))
    # Never bigger than the (16-row padded) batch.
    tb = min(tb, _round_up(B, 16))
    return max(tb, 16)


def _resident_spec(a):
    """Whole-array spec with a constant index_map (fetched once), single-buffered
    so resident weights do not hold 2x VMEM."""
    return pl.BlockSpec(a.shape, lambda i: (0,) * a.ndim,
                        pipeline_mode=pl.Buffered(1))


# ---------------------------------------------------------------------------
# Wrapper
# ---------------------------------------------------------------------------
@functools.partial(jax.jit, static_argnames=("tb", "Fp", "vmem_limit"))
def _sae_forward_impl(x, params, *, tb, Fp, vmem_limit):
    B, F = x.shape
    Bp = _round_up(B, tb)
    grid = (Bp // tb,)

    # Only pad x when the shapes require it (padding is an extra HBM pass).
    if Bp != B or Fp != F:
        x_in = jnp.pad(x, ((0, Bp - B), (0, Fp - F)))
    else:
        x_in = x

    bf16 = jnp.bfloat16
    # w1 transposed -> lane-dense (20, Fp) resident weight.
    w1t = jnp.pad(params["w1"].T.astype(bf16), ((0, 0), (0, Fp - F)))
    w4 = jnp.pad(params["w4"].astype(bf16), ((0, 0), (0, Fp - F)))
    b4 = jnp.pad(params["b4"].astype(jnp.float32), ((0, 0), (0, Fp - F)))
    w2 = params["w2"].astype(bf16)
    w3 = params["w3"].astype(bf16)
    b1 = params["b1"].astype(jnp.float32)
    b2 = params["b2"].astype(jnp.float32)
    b3 = params["b3"].astype(jnp.float32)

    out = pl.pallas_call(
        sae_kernel,
        out_shape=jax.ShapeDtypeStruct((Bp, Fp), jnp.bfloat16),
        grid_spec=pltpu.PrefetchScalarGridSpec(
            num_scalar_prefetch=0,
            grid=grid,
            in_specs=[
                pl.BlockSpec((tb, Fp), lambda i: (i, 0)),   # x tile (f32)
                _resident_spec(w1t), _resident_spec(b1),
                _resident_spec(w2), _resident_spec(b2),
                _resident_spec(w3), _resident_spec(b3),
                _resident_spec(w4), _resident_spec(b4),
            ],
            out_specs=pl.BlockSpec((tb, Fp), lambda i: (i, 0)),
        ),
        compiler_params=pltpu.CompilerParams(
            dimension_semantics=("parallel",),
            vmem_limit_bytes=vmem_limit,
        ),
    )(x_in, w1t, b1, w2, b2, w3, b3, w4, b4)

    # Slice only when padding was actually applied (avoid a useless HBM pass).
    if Bp != B or Fp != F:
        out = out[:B, :F]
    return out


def sae_forward(x, params):
    """x: (B, nb_movies) float32. Returns (B, nb_movies) bfloat16."""
    B, F = x.shape
    Fp = _round_up(F, 128)               # lane-dense output columns
    vmem_limit = _vmem_budget_bytes()
    tb = _pick_batch_tile(B, Fp, vmem_limit)
    return _sae_forward_impl(x, params, tb=tb, Fp=Fp, vmem_limit=vmem_limit)


# ---------------------------------------------------------------------------
# Params / reference
# ---------------------------------------------------------------------------
def init_params(key, nb_movies):
    """Deterministic init matching nn.Linear shapes (stored transposed: (in, out))."""
    dims = [(nb_movies, 20), (20, 10), (10, 20), (20, nb_movies)]
    params = {}
    keys = jax.random.split(key, 2 * len(dims))
    for idx, (fan_in, fan_out) in enumerate(dims):
        bound = 1.0 / jnp.sqrt(fan_in)  # PyTorch default: uniform(-1/sqrt(in), 1/sqrt(in))
        w = jax.random.uniform(keys[2 * idx], (fan_in, fan_out),
                               minval=-bound, maxval=bound, dtype=jnp.float32)
        b = jax.random.uniform(keys[2 * idx + 1], (1, fan_out),
                               minval=-bound, maxval=bound, dtype=jnp.float32)
        params[f"w{idx + 1}"] = w
        params[f"b{idx + 1}"] = b
    return params


def sae_reference(x, params):
    """Pure-JAX reference with the same bf16-in / f32-acc mixed precision."""
    bf16 = jnp.bfloat16
    h = jax.nn.sigmoid(jnp.dot(x.astype(bf16), params["w1"].astype(bf16),
                               preferred_element_type=jnp.float32) + params["b1"])
    h = jax.nn.sigmoid(jnp.dot(h.astype(bf16), params["w2"].astype(bf16),
                               preferred_element_type=jnp.float32) + params["b2"])
    h = jax.nn.sigmoid(jnp.dot(h.astype(bf16), params["w3"].astype(bf16),
                               preferred_element_type=jnp.float32) + params["b3"])
    return jnp.dot(h.astype(bf16), params["w4"].astype(bf16),
                   preferred_element_type=jnp.float32) + params["b4"]


if __name__ == "__main__":
    # Small synthetic setting: nb_movies (feature dim) = 256, batch = 16.
    nb_movies = 256
    batch = 16

    key = jax.random.PRNGKey(0)
    k_x, k_p = jax.random.split(key)
    x = jax.random.uniform(k_x, (batch, nb_movies), dtype=jnp.float32)
    params = init_params(k_p, nb_movies)

    out = jax.block_until_ready(sae_forward(x, params))
    ref = sae_reference(x, params)

    assert out.shape == (batch, nb_movies)
    assert out.dtype == jnp.bfloat16
    # Output is bf16 (kernel stores bf16); compare in f32 with bf16-level tolerance.
    assert jnp.allclose(out.astype(jnp.float32), ref, atol=3e-2, rtol=3e-2), \
        "mismatch vs reference"

    print("KERNEL_OK")
</pallas_src>

<mosaic_0001>
module attributes {stable_mosaic.version = 11 : i64} {
  func.func @sae_kernel(%arg0: i32, %arg1: memref<16x256xf32, #tpu.memory_space<vmem>>, %arg2: memref<20x256xbf16, #tpu.memory_space<vmem>>, %arg3: memref<1x20xf32, #tpu.memory_space<vmem>>, %arg4: memref<20x10xbf16, #tpu.memory_space<vmem>>, %arg5: memref<1x10xf32, #tpu.memory_space<vmem>>, %arg6: memref<10x20xbf16, #tpu.memory_space<vmem>>, %arg7: memref<1x20xf32, #tpu.memory_space<vmem>>, %arg8: memref<20x256xbf16, #tpu.memory_space<vmem>>, %arg9: memref<1x256xf32, #tpu.memory_space<vmem>>, %arg10: memref<16x256xbf16, #tpu.memory_space<vmem>>) attributes {dimension_semantics = [#tpu.dimension_semantics<parallel>], iteration_bounds = array<i64: 1>, scalar_prefetch = 0 : i64, scratch_operands = 0 : i64, tpu.core_type = #tpu.core_type<tc>, window_params = [{transform_indices = @transform_0, window_bounds = array<i64: 16, 256>}, {pipeline_mode = #tpu.pipeline_mode<synchronous>, transform_indices = @transform_1, window_bounds = array<i64: 20, 256>}, {pipeline_mode = #tpu.pipeline_mode<synchronous>, transform_indices = @transform_2, window_bounds = array<i64: 1, 20>}, {pipeline_mode = #tpu.pipeline_mode<synchronous>, transform_indices = @transform_3, window_bounds = array<i64: 20, 10>}, {pipeline_mode = #tpu.pipeline_mode<synchronous>, transform_indices = @transform_4, window_bounds = array<i64: 1, 10>}, {pipeline_mode = #tpu.pipeline_mode<synchronous>, transform_indices = @transform_5, window_bounds = array<i64: 10, 20>}, {pipeline_mode = #tpu.pipeline_mode<synchronous>, transform_indices = @transform_6, window_bounds = array<i64: 1, 20>}, {pipeline_mode = #tpu.pipeline_mode<synchronous>, transform_indices = @transform_7, window_bounds = array<i64: 20, 256>}, {pipeline_mode = #tpu.pipeline_mode<synchronous>, transform_indices = @transform_8, window_bounds = array<i64: 1, 256>}, {transform_indices = @transform_9, window_bounds = array<i64: 16, 256>}]} {
    %c0 = arith.constant 0 : index
    %c0_0 = arith.constant 0 : index
    %0 = vector.load %arg1[%c0, %c0_0] : memref<16x256xf32, #tpu.memory_space<vmem>>, vector<16x256xf32>
    %1 = arith.truncf %0 : vector<16x256xf32> to vector<16x256xbf16>
    %c0_1 = arith.constant 0 : index
    %c0_2 = arith.constant 0 : index
    %2 = vector.load %arg2[%c0_1, %c0_2] : memref<20x256xbf16, #tpu.memory_space<vmem>>, vector<20x256xbf16>
    %cst = arith.constant dense<0.000000e+00> : vector<16x20xf32>
    %3 = tpu.matmul %1, %2, %cst {dimension_numbers = #tpu.dot_dimension_numbers<[1], [1], [0], [0], [0, 0, 1, 0], [], []>} : vector<16x256xbf16>, vector<20x256xbf16>, vector<16x20xf32> -> vector<16x20xf32>
    %c0_3 = arith.constant 0 : index
    %c0_4 = arith.constant 0 : index
    %4 = vector.load %arg3[%c0_3, %c0_4] : memref<1x20xf32, #tpu.memory_space<vmem>>, vector<1x20xf32>
    %5 = vector.broadcast %4 : vector<1x20xf32> to vector<16x20xf32>
    %6 = arith.addf %3, %5 : vector<16x20xf32>
    %7 = arith.negf %6 : vector<16x20xf32>
    %8 = math.exp %7 : vector<16x20xf32>
    %cst_5 = arith.constant 1.000000e+00 : f32
    %9 = vector.broadcast %cst_5 : f32 to vector<16x20xf32>
    %10 = arith.addf %9, %8 : vector<16x20xf32>
    %11 = arith.divf %9, %10 : vector<16x20xf32>
    %12 = arith.truncf %11 : vector<16x20xf32> to vector<16x20xbf16>
    %c0_6 = arith.constant 0 : index
    %c0_7 = arith.constant 0 : index
    %13 = vector.load %arg4[%c0_6, %c0_7] : memref<20x10xbf16, #tpu.memory_space<vmem>>, vector<20x10xbf16>
    %cst_8 = arith.constant dense<0.000000e+00> : vector<16x10xf32>
    %14 = tpu.matmul %12, %13, %cst_8 {dimension_numbers = #tpu.dot_dimension_numbers<[1], [0], [0], [1], [0, 0, 1, 1], [], []>} : vector<16x20xbf16>, vector<20x10xbf16>, vector<16x10xf32> -> vector<16x10xf32>
    %c0_9 = arith.constant 0 : index
    %c0_10 = arith.constant 0 : index
    %15 = vector.load %arg5[%c0_9, %c0_10] : memref<1x10xf32, #tpu.memory_space<vmem>>, vector<1x10xf32>
    %16 = vector.broadcast %15 : vector<1x10xf32> to vector<16x10xf32>
    %17 = arith.addf %14, %16 : vector<16x10xf32>
    %18 = arith.negf %17 : vector<16x10xf32>
    %19 = math.exp %18 : vector<16x10xf32>
    %cst_11 = arith.constant 1.000000e+00 : f32
    %20 = vector.broadcast %cst_11 : f32 to vector<16x10xf32>
    %21 = arith.addf %20, %19 : vector<16x10xf32>
    %22 = arith.divf %20, %21 : vector<16x10xf32>
    %23 = arith.truncf %22 : vector<16x10xf32> to vector<16x10xbf16>
    %c0_12 = arith.constant 0 : index
    %c0_13 = arith.constant 0 : index
    %24 = vector.load %arg6[%c0_12, %c0_13] : memref<10x20xbf16, #tpu.memory_space<vmem>>, vector<10x20xbf16>
    %cst_14 = arith.constant dense<0.000000e+00> : vector<16x20xf32>
    %25 = tpu.matmul %23, %24, %cst_14 {dimension_numbers = #tpu.dot_dimension_numbers<[1], [0], [0], [1], [0, 0, 1, 1], [], []>} : vector<16x10xbf16>, vector<10x20xbf16>, vector<16x20xf32> -> vector<16x20xf32>
    %c0_15 = arith.constant 0 : index
    %c0_16 = arith.constant 0 : index
    %26 = vector.load %arg7[%c0_15, %c0_16] : memref<1x20xf32, #tpu.memory_space<vmem>>, vector<1x20xf32>
    %27 = vector.broadcast %26 : vector<1x20xf32> to vector<16x20xf32>
    %28 = arith.addf %25, %27 : vector<16x20xf32>
    %29 = arith.negf %28 : vector<16x20xf32>
    %30 = math.exp %29 : vector<16x20xf32>
    %cst_17 = arith.constant 1.000000e+00 : f32
    %31 = vector.broadcast %cst_17 : f32 to vector<16x20xf32>
    %32 = arith.addf %31, %30 : vector<16x20xf32>
    %33 = arith.divf %31, %32 : vector<16x20xf32>
    %34 = arith.truncf %33 : vector<16x20xf32> to vector<16x20xbf16>
    %c0_18 = arith.constant 0 : index
    %c0_19 = arith.constant 0 : index
    %35 = vector.load %arg8[%c0_18, %c0_19] : memref<20x256xbf16, #tpu.memory_space<vmem>>, vector<20x256xbf16>
    %cst_20 = arith.constant dense<0.000000e+00> : vector<16x256xf32>
    %36 = tpu.matmul %34, %35, %cst_20 {dimension_numbers = #tpu.dot_dimension_numbers<[1], [0], [0], [1], [0, 0, 1, 1], [], []>} : vector<16x20xbf16>, vector<20x256xbf16>, vector<16x256xf32> -> vector<16x256xf32>
    %c0_21 = arith.constant 0 : index
    %c0_22 = arith.constant 0 : index
    %37 = vector.load %arg9[%c0_21, %c0_22] : memref<1x256xf32, #tpu.memory_space<vmem>>, vector<1x256xf32>
    %38 = vector.broadcast %37 : vector<1x256xf32> to vector<16x256xf32>
    %39 = arith.addf %36, %38 : vector<16x256xf32>
    %40 = arith.truncf %39 : vector<16x256xf32> to vector<16x256xbf16>
    %c0_23 = arith.constant 0 : index
    %c0_24 = arith.constant 0 : index
    %41 = vector.load %arg10[%c0_23, %c0_24] : memref<16x256xbf16, #tpu.memory_space<vmem>>, vector<16x256xbf16>
    tpu.vector_store %arg10[%c0_23, %c0_24], %40 {strides = array<i32>} : memref<16x256xbf16, #tpu.memory_space<vmem>>, vector<16x256xbf16>,
    return
  }
  func.func @transform_0(%arg0: i32) -> (i32, i32) {
    %c0_i32 = arith.constant 0 : i32
    %c0_i32_0 = arith.constant 0 : i32
    return %arg0, %c0_i32 : i32, i32
  }
  func.func @transform_1(%arg0: i32) -> (i32, i32) {
    %c0_i32 = arith.constant 0 : i32
    %c0_i32_0 = arith.constant 0 : i32
    %c0_i32_1 = arith.constant 0 : i32
    return %c0_i32, %c0_i32_0 : i32, i32
  }
  func.func @transform_2(%arg0: i32) -> (i32, i32) {
    %c0_i32 = arith.constant 0 : i32
    %c0_i32_0 = arith.constant 0 : i32
    %c0_i32_1 = arith.constant 0 : i32
    return %c0_i32, %c0_i32_0 : i32, i32
  }
  func.func @transform_3(%arg0: i32) -> (i32, i32) {
    %c0_i32 = arith.constant 0 : i32
    %c0_i32_0 = arith.constant 0 : i32
    %c0_i32_1 = arith.constant 0 : i32
    return %c0_i32, %c0_i32_0 : i32, i32
  }
  func.func @transform_4(%arg0: i32) -> (i32, i32) {
    %c0_i32 = arith.constant 0 : i32
    %c0_i32_0 = arith.constant 0 : i32
    %c0_i32_1 = arith.constant 0 : i32
    return %c0_i32, %c0_i32_0 : i32, i32
  }
  func.func @transform_5(%arg0: i32) -> (i32, i32) {
    %c0_i32 = arith.constant 0 : i32
    %c0_i32_0 = arith.constant 0 : i32
    %c0_i32_1 = arith.constant 0 : i32
    return %c0_i32, %c0_i32_0 : i32, i32
  }
  func.func @transform_6(%arg0: i32) -> (i32, i32) {
    %c0_i32 = arith.constant 0 : i32
    %c0_i32_0 = arith.constant 0 : i32
    %c0_i32_1 = arith.constant 0 : i32
    return %c0_i32, %c0_i32_0 : i32, i32
  }
  func.func @transform_7(%arg0: i32) -> (i32, i32) {
    %c0_i32 = arith.constant 0 : i32
    %c0_i32_0 = arith.constant 0 : i32
    %c0_i32_1 = arith.constant 0 : i32
    return %c0_i32, %c0_i32_0 : i32, i32
  }
  func.func @transform_8(%arg0: i32) -> (i32, i32) {
    %c0_i32 = arith.constant 0 : i32
    %c0_i32_0 = arith.constant 0 : i32
    %c0_i32_1 = arith.constant 0 : i32
    return %c0_i32, %c0_i32_0 : i32, i32
  }
  func.func @transform_9(%arg0: i32) -> (i32, i32) {
    %c0_i32 = arith.constant 0 : i32
    %c0_i32_0 = arith.constant 0 : i32
    return %arg0, %c0_i32 : i32, i32
  }
}

</mosaic_0001>

<bundles_post_ra>
// kernel: _sae_forward_impl.1
= control target key start
LH: loop header
LB: loop body
LE: loop exit
PB: predicated region body
PF: predicated region fallthrough
CT: control target
= control target key end

     0   :  { %s619_s0 = inlined_call_operand.vmem [shape: f32[16,256], index: 0, kind: input, shape index: {}]   ;;  %s620_s1 = inlined_call_operand.vmem [shape: bf16[20,256], index: 1, kind: input, shape index: {}]   ;;  %s621_s2 = inlined_call_operand.vmem [shape: f32[1,20], index: 2, kind: input, shape index: {}]   ;;  %s622_s3 = inlined_call_operand.vmem [shape: bf16[20,10], index: 3, kind: input, shape index: {}]   ;;  %s623_s4 = inlined_call_operand.vmem [shape: f32[1,10], index: 4, kind: input, shape index: {}]   ;;  %s624_s5 = inlined_call_operand.vmem [shape: bf16[10,20], index: 5, kind: input, shape index: {}]   ;;  %s625_s6 = inlined_call_operand.vmem [shape: f32[1,20], index: 6, kind: input, shape index: {}]   ;;  %s626_s7 = inlined_call_operand.vmem [shape: bf16[20,256], index: 7, kind: input, shape index: {}]   ;;  %s627_s8 = inlined_call_operand.vmem [shape: f32[1,256], index: 8, kind: input, shape index: {}]   ;;  %s628_s9 = inlined_call_operand.hbm [shape: bf16[16,256], index: 9, kind: output, shape index: {}]  }
   0x1   :  { %v42_v0 = vld [vmem:[%s620_s1 + $0x10] sm:$0x33]  ;;  %v445_v3 = vld [vmem:[%s620_s1 + $0x4] ss:$8 sps:$4 sm:$0xff]   ;;  %v37_v5 = vld [vmem:[%s619_s0 + $0x18] sm:$0xff] }
   0x2   :  { %v394_v1 = vcombine.high %v42_v0, %v42_v0  ;;  %v393_v2 = vcombine.low %v42_v0, %v42_v0  ;;  %v35_v4 = vld [vmem:[%s619_s0 + $0x8] sm:$0xff] }
   0x3   :  { %v39_v6 = vpack.c.bf16 %v37_v5, %v35_v4 }
   0x4   :  { %79 = vmatprep.subr.bf16.mxu0 %v394_v1 }
   0x5   :  { %80 = vmatpush1.bf16.xpose.msra.mxu0 %v393_v2  ;;  %99 = vmatprep.mubr.bf16.mxu0 %v39_v6 }
   0x6   :  { %81 = vmatprep.subr.bf16.mxu0 %v445_v3 }
   0x7   :  { %14 = vsyncpa [#allocation3], 0  ;;  %v447_v7 = vld [vmem:[%s620_s1] ss:$8 sps:$4 sm:$0xff]   ;;  %v36_v9 = vld [vmem:[%s619_s0 + $0x10] sm:$0xff]  ;;  %vm144_vm0 = vcmask 1041408  }
   0x8   :  { %v34_v8 = vld [vmem:[%s619_s0] sm:$0xff]  ;;  %v448_v11 = vld [vmem:[%s622_s3 + $0x8] ss:$0 sps:$4 sm:$0x33]   ;;  %v502_v12 = vmov 0.0   ;;  %vm503_vm1 = vmmov 0  }
   0x9   :  { %v38_v10 = vpack.c.bf16 %v36_v9, %v34_v8  ;;  %423 = vmatprep.subr.bf16.mxu1 %v502_v12  ;;  %v146_v13 = vsel %vm144_vm0, %v448_v11, 0  ;;  %427 = vmatprep.mubr.msk.bf16.mxu1 %vm503_vm1, %v502_v12  ;;  %v449_v14 = vld [vmem:[%s622_s3] sm:$0xff]   ;;  %vm140_vm2 = vcmask 162816   ;;  %vm220_vm3 = vcmask 1044480   ;;  %v280_v49 = vld [vmem:[%s626_s7 + $0x10] sm:$0x33] }
   0xa   :  { %424 = vmatpush3.bf16.msra.mxu1 %v146_v13  ;;  %v390_v15 = vld [vmem:[%s621_s2] ss:$0 sm:$0xff]  ;;  %vm216_vm4 = vcmask 80896   ;;  %v411_v50 = vcombine.high %v280_v49, %v280_v49  ;;  %v410_v51 = vcombine.low %v280_v49, %v280_v49  ;;  %v455_v52 = vld [vmem:[%s626_s7 + $0x4] ss:$8 sps:$4 sm:$0xff]   ;;  %v504_v53 = vmov 0  }
   0xb   :  { %425 = vmatprep.subr.bf16.mxu1 %v502_v12  ;;  %v450_v31 = vld [vmem:[%s624_s5] sm:$0x1f]   ;;  %v283_v8 = vlaneseq  ;;  %s505_s14 = smov [#allocation2]  }
   0xc   :  { %v222_v32 = vsel %vm220_vm3, %v450_v31, 0  ;;  %v397_v33 = vld [vmem:[%s623_s4] ss:$0 sm:$0xff]  ;;  %v312_v54 = vsel %vm144_vm0, %v410_v51, 0  ;;  %s379_s15 = sshll.u32 %s505_s14, 4  ;;  %s380_s15 = int_to_ptr.vmem [resolvable:$true] %s379_s15 }
   0xd   :  { %82 = vmatpush1.bf16.xpose.msra.mxu0 %v447_v7  ;;  %v453_v55 = vld [vmem:[%s626_s7] ss:$8 sps:$4 sm:$0xff]   ;;  %v284_v9 = vshrl.u32 %v283_v8, 7  ;;  %s480_s16 = scalar_lea.vmem %s380_s15, 256  ;;  %p485_p1 = scmp.lt.s32.totalorder %s380_s15, %s380_s15 }
   0xe   :  { %426 = vmatpush3.bf16.msra.mxu1 %v449_v14  ;;  %412 = vmatprep.subr.msk.bf16.mxu0 %vm144_vm0, %v411_v50  ;;  %v403_v56 = vld [vmem:[%s625_s6] ss:$0 sm:$0xff]  ;;  %p481_p0 = scmp.ne.s32.totalorder %s380_s15, %s480_s16  ;;  %p486_p2 = scmp.lt.s32.totalorder %s480_s16, %s480_s16 }
   0xf   :  { %431 = vmatprep.subr.bf16.mxu1 %v502_v12  ;;  %v289_v11 = vsub.s32 1, %v284_v9 }
  0x10   :  { %p487_p3 = por %p486_p2, %p485_p1 }
  0x12   :  { %p488_p4 = pnand %p487_p3, %p481_p0 }
  0x14   :  { %100 = vmatmul.mubr.bf16.vlgmr.msra.gmra.mxu0 %v38_v10  ;;  %v285_v10 = vsub.s32 0, %v284_v9 }
  0x15   :  { %349 = vmatprep.mubr.bf16.mxu0 %v504_v53  ;;  %330 = vmatpush1.bf16.msra.mxu0 %v312_v54 }
  0x16   :  { %331 = vmatprep.subr.bf16.mxu0 %v455_v52 }
  0x19   :  { %332 = vmatpush1.bf16.msra.mxu0 %v453_v55 }
  0xd4   :  { %v101_v16 = vpop.f32.mrf.mxu0 }
  0xd5   :  { %v102_v17 = vadd.f32 %v390_v15, %v101_v16 }
  0xd6   :  { %v103_v18 = vpop.f32.mrf.mxu0 }
  0xd7   :  { %v395_v19 = vmul.f32 -1.442695, %v102_v17 }
  0xd8   :  { %v104_v20 = vpop.f32.mrf.mxu0 }
  0xd9   :  { %456 = vpow2.f32 %v395_v19  ;;  %v105_v21 = vadd.f32 %v390_v15, %v104_v20 }
  0xda   :  { %v106_v22 = vpop.f32.mrf.mxu0 }
  0xdb   :  { %v396_v23 = vmul.f32 -1.442695, %v105_v21 }
  0xdd   :  { %458 = vpow2.f32 %v396_v23 }
  0xe6   :  { %v457_v24 = vpop.eup %456 }
  0xe7   :  { %v114_v25 = vadd.f32 1.0, %v457_v24 }
  0xe9   :  { %460 = vrcp.f32 %v114_v25 }
  0xea   :  { %v459_v26 = vpop.eup %458 }
  0xeb   :  { %v115_v27 = vadd.f32 1.0, %v459_v26 }
  0xed   :  { %462 = vrcp.f32 %v115_v27 }
  0xf6   :  { %v461_v28 = vpop.eup %460 }
  0xfa   :  { %v463_v29 = vpop.eup %462 }
  0xfb   :  { %v120_v30 = vpack.c.bf16 %v463_v29, %v461_v28 }
  0xfd   :  { %428 = vmatmul.mubr.msk.bf16.vlgmr.msra.gmra.mxu1 %vm140_vm2, %v120_v30 }
  0xfe   :  { %433 = vmatprep.mubr.msk.bf16.mxu1 %vm503_vm1, %v502_v12  ;;  %432 = vmatpush3.bf16.msra.mxu1 %v222_v32  ;;  %v281_v12 = vld [vmem:[%s627_s8] sm:$0x3] }
  0xff   :  { %v286_v13 = vrot.slane %v281_v12, %v285_v10  ;;  %v290_v14 = vrot.slane %v281_v12, %v289_v11 }
 0x1bd   :  { %v182_v34 = vpop.f32.mrf.mxu1 }
 0x1be   :  { %v183_v35 = vadd.f32 %v397_v33, %v182_v34 }
 0x1bf   :  { %v429_v36 = vpop.f32.mrf.mxu1 }
 0x1c0   :  { %v401_v37 = vmul.f32 -1.442695, %v183_v35 }
 0x1c1   :  { %v185_v38 = vpop.f32.mrf.mxu1 }
 0x1c2   :  { %464 = vpow2.f32 %v401_v37  ;;  %v186_v39 = vadd.f32 %v397_v33, %v185_v38 }
 0x1c3   :  { %v430_v40 = vpop.f32.mrf.mxu1 }
 0x1c4   :  { %v402_v41 = vmul.f32 -1.442695, %v186_v39 }
 0x1c6   :  { %466 = vpow2.f32 %v402_v41 }
 0x1cf   :  { %v465_v42 = vpop.eup %464 }
 0x1d0   :  { %v195_v43 = vadd.f32 1.0, %v465_v42 }
 0x1d2   :  { %468 = vrcp.f32 %v195_v43 }
 0x1d3   :  { %v467_v44 = vpop.eup %466 }
 0x1d4   :  { %v196_v45 = vadd.f32 1.0, %v467_v44 }
 0x1d6   :  { %470 = vrcp.f32 %v196_v45 }
 0x1df   :  { %v469_v46 = vpop.eup %468 }
 0x1e3   :  { %v471_v47 = vpop.eup %470 }
 0x1e4   :  { %v201_v48 = vpack.c.bf16 %v471_v47, %v469_v46 }
 0x1e6   :  { %434 = vmatmul.mubr.msk.bf16.vlgmr.msra.gmra.mxu1 %vm216_vm4, %v201_v48 }
 0x2a6   :  { %v258_v57 = vpop.f32.mrf.mxu1 }
 0x2a7   :  { %v259_v58 = vadd.f32 %v403_v56, %v258_v57 }
 0x2a8   :  { %v435_v59 = vpop.f32.mrf.mxu1 }
 0x2a9   :  { %v406_v60 = vmul.f32 -1.442695, %v259_v58 }
 0x2aa   :  { %v261_v61 = vpop.f32.mrf.mxu1 }
 0x2ab   :  { %472 = vpow2.f32 %v406_v60  ;;  %v262_v62 = vadd.f32 %v403_v56, %v261_v61 }
 0x2ac   :  { %v436_v63 = vpop.f32.mrf.mxu1 }
 0x2ad   :  { %v407_v0 = vmul.f32 -1.442695, %v262_v62 }
 0x2af   :  { %474 = vpow2.f32 %v407_v0 }
 0x2b8   :  { %v473_v1 = vpop.eup %472 }
 0x2b9   :  { %v271_v2 = vadd.f32 1.0, %v473_v1 }
 0x2bb   :  { %476 = vrcp.f32 %v271_v2 }
 0x2bc   :  { %v475_v3 = vpop.eup %474 }
 0x2bd   :  { %v272_v4 = vadd.f32 1.0, %v475_v3 }
 0x2bf   :  { %478 = vrcp.f32 %v272_v4 }
 0x2c8   :  { %v477_v5 = vpop.eup %476 }
 0x2cc   :  { %v479_v6 = vpop.eup %478 }
 0x2cd   :  { %v277_v7 = vpack.c.bf16 %v479_v6, %v477_v5 }
 0x2cf   :  { %413 = vmatmul.mubr.msk.bf16.vlgmr.msra.gmra.mxu0 %vm140_vm2, %v277_v7 }
 0x38f   :  { %v351_v15 = vpop.f32.mrf.mxu0 }
 0x390   :  { %v352_v17 = vadd.f32 %v351_v15, %v286_v13 }
 0x391   :  { %v353_v16 = vpop.f32.mrf.mxu0 }
 0x392   :  { %v354_v18 = vadd.f32 %v353_v16, %v290_v14 }
 0x393   :  { %v355_v19 = vpop.f32.mrf.mxu0 }
 0x394   :  { %v416_v20 = vpack.c.bf16 %v354_v18, %v352_v17  ;;  %v356_v22 = vadd.f32 %v355_v19, %v286_v13 }
 0x395   :  { %v357_v21 = vpop.f32.mrf.mxu0 }
 0x396   :  { %372 = vst [vmem:[#allocation2] sm:$0xff] %v416_v20  ;;  %v358_v23 = vadd.f32 %v357_v21, %v290_v14 }
 0x398   :  { %v417_v24 = vpack.c.bf16 %v358_v23, %v356_v22 }
 0x39a   :  { %373 = vst [vmem:[#allocation2 + $0x8] sm:$0xff] %v417_v24 }
 0x39b   :  { %491 = shalt.err (!%p488_p4)
}
 0x39c   :  { %s506_s8 = smov 128   ;;  %s507_s17 = smov 8  }
 0x39d   :  { %385 = dma.vmem_to_hbm [thread:$0]  %s380_s15, 256, %s628_s9, [#allocation3], %s506_s8, %s506_s8, %s507_s17  }
 0x39e   :  { %500 = dma.done.wait [#allocation3], 256  }
 0x39f   :  { %501 = vsyncadd [#allocation3], 4294967040 }
 0x3a0   :  { %389 = vsyncpa [#allocation3], 1 }

</bundles_post_ra>
